<compile_context>
chip_gen: v7x
topology: tpu7x:2x2x1
jax: 0.10.0
libtpu: 0.0.40
codegen_flags: <defaults>
</compile_context>

<pallas_src>
import functools

import jax
import jax.numpy as jnp
from jax.experimental import pallas as pl
from jax.experimental.pallas import tpu as pltpu


def _round_up(x: int, m: int) -> int:
    return ((x + m - 1) // m) * m


# -----------------------------------------------------------------------------
# Kernels
# -----------------------------------------------------------------------------

def _smearing_kernel_rows(dist_ref, out_ref, *, coeff, start, step, resolution):
    # Module-contract layout:
    #   dist_ref: (bn, 1)           f32  (rows -> sublanes)
    #   out_ref:  (bn, resolution)       (resolution -> lanes; lane-padded when R < 128)
    d = dist_ref[...].astype(jnp.float32)                                 # (bn, 1)
    r = jax.lax.broadcasted_iota(jnp.int32, (1, resolution), 1).astype(jnp.float32)
    off = start + step * r                                                # (1, R)
    diff = d - off                                                        # (bn, R)
    out_ref[...] = jnp.exp(coeff * (diff * diff)).astype(out_ref.dtype)


def _smearing_kernel_lanes(dist_ref, out_ref, *, coeff, start, step, resolution):
    # Lane-dense (transposed) layout:
    #   dist_ref: (1, bn)           f32  (N -> lanes, dense block)
    #   out_ref:  (resolution, bn)       (N -> lanes => unmasked full-width stores)
    d = dist_ref[...].astype(jnp.float32)                                 # (1, bn)
    r = jax.lax.broadcasted_iota(jnp.int32, (resolution, 1), 0).astype(jnp.float32)
    off = start + step * r                                                # (R, 1)  sublane iota
    diff = d - off                                                        # (R, bn)
    # Math in f32; cast only at the store (bf16 output is opt-in via out_dtype).
    out_ref[...] = jnp.exp(coeff * (diff * diff)).astype(out_ref.dtype)


# -----------------------------------------------------------------------------
# Wrapper
# -----------------------------------------------------------------------------

def gaussian_smearing(dist, start=0.0, stop=5.0, resolution=50, width=0.05,
                      *, block_n=None, out_dtype=None, transposed=False):
    """GaussianSmearing.forward.

    dist: (N,) float array.
    Returns (N, resolution) by default (module contract), or (resolution, N) when
    `transposed=True` (lane-dense fast path; N on the lane axis).
    `out_dtype` (e.g. jnp.bfloat16) is opt-in; compute stays in f32.
    """
    assert dist.ndim == 1
    n = dist.shape[0]
    resolution = int(resolution)
    out_dtype = dist.dtype if out_dtype is None else out_dtype

    # Exactly the module's constants.
    coeff = float(-0.5 / ((stop - start) * width) ** 2)
    step = float((stop - start) / (resolution - 1)) if resolution > 1 else 0.0

    if transposed:
        align, default_bn = 128, 16384   # (56 x 16384) f32 out tile ~3.7 MiB / buffer
    else:
        align, default_bn = 8, 2048      # padded (2048,128) tiles: ~4 MiB double-buffered

    bn = default_bn if block_n is None else int(block_n)
    # Cap the tile at ~half the (aligned) problem so the "parallel" grid axis gets
    # >= 2 steps whenever possible -> both v7x TensorCores have work.
    half = _round_up(max(1, pl.cdiv(n, 2)), align)
    bn = max(align, min(_round_up(bn, align), half))
    grid_n = pl.cdiv(n, bn)

    # Pad dist (tiny: N floats) so every input block reads defined data; the ragged
    # rows/lanes of the last *output* block are masked by Pallas (out_shape is exact).
    n_pad = grid_n * bn
    dist_p = dist if n_pad == n else jnp.pad(dist, (0, n_pad - n))

    if transposed:
        dist2d = dist_p.reshape(1, n_pad)
        kernel = functools.partial(_smearing_kernel_lanes, coeff=coeff,
                                   start=float(start), step=step, resolution=resolution)
        out_shape = jax.ShapeDtypeStruct((resolution, n), out_dtype)
        in_specs = [pl.BlockSpec((1, bn), lambda i: (0, i))]
        out_specs = pl.BlockSpec((resolution, bn), lambda i: (0, i))
    else:
        dist2d = dist_p.reshape(n_pad, 1)
        kernel = functools.partial(_smearing_kernel_rows, coeff=coeff,
                                   start=float(start), step=step, resolution=resolution)
        out_shape = jax.ShapeDtypeStruct((n, resolution), out_dtype)
        in_specs = [pl.BlockSpec((bn, 1), lambda i: (i, 0))]
        out_specs = pl.BlockSpec((bn, resolution), lambda i: (i, 0))

    return pl.pallas_call(
        kernel,
        out_shape=out_shape,
        grid=(grid_n,),
        in_specs=in_specs,
        out_specs=out_specs,
        compiler_params=pltpu.CompilerParams(
            dimension_semantics=("parallel",),       # independent tiles (v7x megacore)
            vmem_limit_bytes=32 * 1024 * 1024,       # safe on v5e/v6e/v7x scoped limits
        ),
    )(dist2d)


# -----------------------------------------------------------------------------
# Demo / self-test
# -----------------------------------------------------------------------------

if __name__ == "__main__":
    key = jax.random.PRNGKey(0)
    start, stop, resolution, width = 0.0, 5.0, 50, 0.05

    # N not a multiple of 8 or 128: exercises the ragged last block in both layouts.
    N = 300
    dist = jax.random.uniform(key, (N,), dtype=jnp.float32, minval=0.0, maxval=stop)

    # Pure-JAX reference mirroring the PyTorch forward exactly.
    coeff = -0.5 / ((stop - start) * width) ** 2
    offset = jnp.linspace(start, stop, resolution, dtype=jnp.float32)
    ref = jnp.exp(coeff * (dist[:, None] - offset[None, :]) ** 2)

    # 1) Module-contract (N, resolution) path, default tiling.
    out = jax.block_until_ready(gaussian_smearing(
        dist, start=start, stop=stop, resolution=resolution, width=width))
    assert out.shape == (N, resolution)
    assert jnp.allclose(out, ref, atol=1e-5, rtol=1e-5)

    # 2) Module-contract path, forced tiny tile (multi-step grid + masked tail rows).
    out2 = jax.block_until_ready(gaussian_smearing(
        dist, start=start, stop=stop, resolution=resolution, width=width, block_n=64))
    assert out2.shape == (N, resolution)
    assert jnp.allclose(out2, ref, atol=1e-5, rtol=1e-5)

    # 3) Lane-dense transposed fast path (resolution, N).
    out_t = jax.block_until_ready(gaussian_smearing(
        dist, start=start, stop=stop, resolution=resolution, width=width, transposed=True))
    assert out_t.shape == (resolution, N)
    assert jnp.allclose(out_t, ref.T, atol=1e-5, rtol=1e-5)

    # 4) Transposed path with the minimum 128-lane tile (multi-step grid + ragged lanes).
    out_t2 = jax.block_until_ready(gaussian_smearing(
        dist, start=start, stop=stop, resolution=resolution, width=width,
        transposed=True, block_n=128))
    assert out_t2.shape == (resolution, N)
    assert jnp.allclose(out_t2, ref.T, atol=1e-5, rtol=1e-5)

    # 5) Opt-in bf16 output (halves HBM writeback bytes; math stays f32).
    out_bf16 = jax.block_until_ready(gaussian_smearing(
        dist, start=start, stop=stop, resolution=resolution, width=width,
        transposed=True, out_dtype=jnp.bfloat16))
    assert out_bf16.dtype == jnp.bfloat16
    assert jnp.allclose(out_bf16.astype(jnp.float32), ref.T, atol=2e-2, rtol=2e-2)

    print("KERNEL_OK")
</pallas_src>

<mosaic_0001>
module attributes {stable_mosaic.version = 11 : i64} {
  func.func @_smearing_kernel_rows(%arg0: i32, %arg1: memref<152x1xf32, #tpu.memory_space<vmem>>, %arg2: memref<152x50xf32, #tpu.memory_space<vmem>>) attributes {dimension_semantics = [#tpu.dimension_semantics<parallel>], iteration_bounds = array<i64: 2>, scalar_prefetch = 0 : i64, scratch_operands = 0 : i64, tpu.core_type = #tpu.core_type<tc>, window_params = [{transform_indices = @transform_0, window_bounds = array<i64: 152, 1>}, {transform_indices = @transform_1, window_bounds = array<i64: 152, 50>}]} {
    %c0 = arith.constant 0 : index
    %c0_0 = arith.constant 0 : index
    %0 = vector.load %arg1[%c0, %c0_0] : memref<152x1xf32, #tpu.memory_space<vmem>>, vector<152x1xf32>
    %1 = tpu.iota {dimensions = array<i32: 1>} : vector<1x50xi32>
    %2 = arith.sitofp %1 : vector<1x50xi32> to vector<1x50xf32>
    %cst = arith.constant 0.10204082 : f32
    %3 = vector.broadcast %cst : f32 to vector<1x50xf32>
    %4 = arith.mulf %3, %2 : vector<1x50xf32>
    %cst_1 = arith.constant 0.000000e+00 : f32
    %5 = vector.broadcast %cst_1 : f32 to vector<1x50xf32>
    %6 = arith.addf %5, %4 : vector<1x50xf32>
    %7 = vector.broadcast %0 : vector<152x1xf32> to vector<152x50xf32>
    %8 = vector.broadcast %6 : vector<1x50xf32> to vector<152x50xf32>
    %9 = arith.subf %7, %8 : vector<152x50xf32>
    %10 = arith.mulf %9, %9 : vector<152x50xf32>
    %cst_2 = arith.constant -8.000000e+00 : f32
    %11 = vector.broadcast %cst_2 : f32 to vector<152x50xf32>
    %12 = arith.mulf %11, %10 : vector<152x50xf32>
    %13 = math.exp %12 : vector<152x50xf32>
    %c0_3 = arith.constant 0 : index
    %c0_4 = arith.constant 0 : index
    %14 = vector.load %arg2[%c0_3, %c0_4] : memref<152x50xf32, #tpu.memory_space<vmem>>, vector<152x50xf32>
    tpu.vector_store %arg2[%c0_3, %c0_4], %13 {strides = array<i32>} : memref<152x50xf32, #tpu.memory_space<vmem>>, vector<152x50xf32>,
    return
  }
  func.func @transform_0(%arg0: i32) -> (i32, i32) {
    %c0_i32 = arith.constant 0 : i32
    %c0_i32_0 = arith.constant 0 : i32
    return %arg0, %c0_i32 : i32, i32
  }
  func.func @transform_1(%arg0: i32) -> (i32, i32) {
    %c0_i32 = arith.constant 0 : i32
    %c0_i32_0 = arith.constant 0 : i32
    return %arg0, %c0_i32 : i32, i32
  }
}

</mosaic_0001>

<bundles_post_ra>
// kernel: tpu_custom_call.1
= control target key start
LH: loop header
LB: loop body
LE: loop exit
PB: predicated region body
PF: predicated region fallthrough
CT: control target
= control target key end

     0   :  { %s487_s6 = smov 0   ;;  %s593_s0 = inlined_call_operand.vmem [shape: f32[304,1], index: 0, kind: input, shape index: {}]   ;;  %s594_s1 = inlined_call_operand.vmem [shape: f32[300,50], index: 1, kind: output, shape index: {}]  }
   0x1 LB: > { %s410_s7 = sadd.s32 4294967295, %s474_s6   ;;  %p414_p0 = scmp.ge.s32.totalorder %s474_s6, 1  ;;  %s474_s6 = sphi %s487_s6, %s11_s6  }
   0x2   : > { %p88_p1 = scmp.lt.s32.totalorder %s474_s6, 3 }
   0x4   : > { %p89_p2 = pnand %p414_p0, %p88_p1 }
   0x5   : > { %s108_s8 = smul.u32 (!%p89_p2), 19, %s410_s7  ;;  %v476_v0 = vmov (!%p89_p2), 0   ;;  %v139_v20 = vlaneseq (!%p89_p2)  ;;  %vm334_vm0 = vcmask (!%p89_p2), 408576  }
   0x6   : > { %92 = sbr.rel (%p89_p2) target bundleno = 202 (0xca), region = 24  ;;  %429 = vset.pattern.permute.xlu1 (!%p89_p2), %v476_v0  ;;  %428 = vset.pattern.permute.xlu0 (!%p89_p2), %v476_v0 }
   0x7   : > { %p109_p3 = scmp.lt.s32.totalorder (!%p89_p2), %s108_s8, 37  ;;  %v140_v21 = vand.u32 (!%p89_p2), 127, %v139_v20 }
   0x9   : > { %v141_v22 = vcvt.s32.f32 (!%p89_p2), %v140_v21 }
   0xb   : > { %v524_v23 = vmul.f32 (!%p89_p2), 0.10204082, %v141_v22 }
   0xd   : > { %s596_s8 = smov (!%p109_p3, %s108_s8), 37 }
   0xe   : > { %s415_s9 = sshll.u32 %s596_s8, 3 }
   0xf   : > { %s503_s12 = scalar_lea.vmem %s593_s0, %s415_s9  ;;  %s540_s15 = scalar_lea.vmem %s594_s1, %s415_s9 }
  0x10   : > { %v122_v1 = vld [vmem:[%s503_s12 + $0x10] sm:$0xff]  ;;  %v120_v2 = vld [vmem:[%s503_s12] sm:$0xff]  ;;  %v123_v3 = vld [vmem:[%s503_s12 + $0x18] sm:$0xff] }
  0x11   : > { %156 = vperm.xlu1 %429, %v122_v1   ;;  %146 = vperm.xlu0 %428, %v120_v2   ;;  %v121_v4 = vld [vmem:[%s503_s12 + $0x8] sm:$0xff]  ;;  %v124_v6 = vld [vmem:[%s503_s12 + $0x20] sm:$0xff]  ;;  %v127_v7 = vld [vmem:[%s503_s12 + $0x38] sm:$0xff] }
  0x12   : > { %v125_v5 = vld [vmem:[%s503_s12 + $0x28] sm:$0xff]  ;;  %v126_v8 = vld [vmem:[%s503_s12 + $0x30] sm:$0xff]  ;;  %v128_v10 = vld [vmem:[%s503_s12 + $0x40] sm:$0xff] }
  0x13   : > { %v129_v9 = vld [vmem:[%s503_s12 + $0x48] sm:$0xff]  ;;  %v131_v11 = vld [vmem:[%s503_s12 + $0x58] sm:$0xff]  ;;  %v130_v12 = vld [vmem:[%s503_s12 + $0x50] sm:$0xff] }
  0x14   : > { %v133_v13 = vld [vmem:[%s503_s12 + $0x68] sm:$0xff]  ;;  %v132_v14 = vld [vmem:[%s503_s12 + $0x60] sm:$0xff]  ;;  %v135_v15 = vld [vmem:[%s503_s12 + $0x78] sm:$0xff] }
  0x15   : > { %161 = vperm.xlu1 %429, %v123_v3   ;;  %151 = vperm.xlu0 %428, %v121_v4   ;;  %v134_v16 = vld [vmem:[%s503_s12 + $0x70] sm:$0xff]  ;;  %v137_v17 = vld [vmem:[%s503_s12 + $0x88] sm:$0xff]  ;;  %v136_v18 = vld [vmem:[%s503_s12 + $0x80] sm:$0xff] }
  0x16   : > { %v138_v19 = vld [vmem:[%s503_s12 + $0x90] sm:$0xff] }
  0x19   : > { %171 = vperm.xlu1 %429, %v125_v5   ;;  %166 = vperm.xlu0 %428, %v124_v6  }
  0x1d   : > { %181 = vperm.xlu1 %429, %v127_v7   ;;  %176 = vperm.xlu0 %428, %v126_v8  }
  0x21   : > { %191 = vperm.xlu1 %429, %v129_v9   ;;  %186 = vperm.xlu0 %428, %v128_v10  }
  0x25   : > { %201 = vperm.xlu1 %429, %v131_v11   ;;  %196 = vperm.xlu0 %428, %v130_v12  }
  0x29   : > { %211 = vperm.xlu1 %429, %v133_v13   ;;  %206 = vperm.xlu0 %428, %v132_v14  }
  0x2d   : > { %221 = vperm.xlu1 %429, %v135_v15   ;;  %216 = vperm.xlu0 %428, %v134_v16  }
  0x31   : > { %231 = vperm.xlu1 %429, %v137_v17   ;;  %226 = vperm.xlu0 %428, %v136_v18  }
  0x35   : > { %236 = vperm.xlu0 %428, %v138_v19  }
  0x90   : > { %v157_v24 = vpop.permute.xlu1 %156  ;;  %v147_v25 = vpop.permute.xlu0 %146 }
  0x91   : > { %v241_v26 = vsub.f32 %v157_v24, %v524_v23  ;;  %v239_v27 = vsub.f32 %v147_v25, %v524_v23 }
  0x93   : > { %v260_v28 = vmul.f32 %v241_v26, %v241_v26  ;;  %v258_v29 = vmul.f32 %v239_v27, %v239_v27 }
  0x94   : > { %v162_v30 = vpop.permute.xlu1 %161  ;;  %v152_v31 = vpop.permute.xlu0 %151 }
  0x95   : > { %v279_v32 = vmul.f32 -8.0, %v260_v28  ;;  %v277_v33 = vmul.f32 -8.0, %v258_v29  ;;  %v242_v34 = vsub.f32 %v162_v30, %v524_v23  ;;  %v240_v35 = vsub.f32 %v152_v31, %v524_v23 }
  0x97   : > { %v300_v36 = vmul.f32 1.442695, %v279_v32  ;;  %v296_v37 = vmul.f32 1.442695, %v277_v33  ;;  %v261_v38 = vmul.f32 %v242_v34, %v242_v34  ;;  %v259_v39 = vmul.f32 %v240_v35, %v240_v35 }
  0x98   : > { %v172_v40 = vpop.permute.xlu1 %171  ;;  %v167_v41 = vpop.permute.xlu0 %166 }
  0x99   : > { %430 = vpow2.f32 %v300_v36  ;;  %v280_v42 = vmul.f32 -8.0, %v261_v38  ;;  %v278_v43 = vmul.f32 -8.0, %v259_v39  ;;  %v244_v44 = vsub.f32 %v172_v40, %v524_v23 }
  0x9a   : > { %432 = vpow2.f32 %v296_v37  ;;  %v243_v45 = vsub.f32 %v167_v41, %v524_v23 }
  0x9b   : > { %v302_v46 = vmul.f32 1.442695, %v280_v42  ;;  %v298_v47 = vmul.f32 1.442695, %v278_v43  ;;  %v263_v48 = vmul.f32 %v244_v44, %v244_v44 }
  0x9c   : > { %v262_v49 = vmul.f32 %v243_v45, %v243_v45  ;;  %v182_v50 = vpop.permute.xlu1 %181  ;;  %v177_v51 = vpop.permute.xlu0 %176 }
  0x9d   : > { %434 = vpow2.f32 %v302_v46  ;;  %v282_v52 = vmul.f32 -8.0, %v263_v48  ;;  %v246_v53 = vsub.f32 %v182_v50, %v524_v23  ;;  %v245_v54 = vsub.f32 %v177_v51, %v524_v23 }
  0x9e   : > { %436 = vpow2.f32 %v298_v47  ;;  %v281_v55 = vmul.f32 -8.0, %v262_v49 }
  0x9f   : > { %v306_v56 = vmul.f32 1.442695, %v282_v52  ;;  %v265_v57 = vmul.f32 %v246_v53, %v246_v53  ;;  %v264_v58 = vmul.f32 %v245_v54, %v245_v54 }
  0xa0   : > { %v304_v59 = vmul.f32 1.442695, %v281_v55  ;;  %v192_v60 = vpop.permute.xlu1 %191  ;;  %v187_v61 = vpop.permute.xlu0 %186 }
  0xa1   : > { %438 = vpow2.f32 %v306_v56  ;;  %v284_v62 = vmul.f32 -8.0, %v265_v57  ;;  %v283_v63 = vmul.f32 -8.0, %v264_v58  ;;  %v248_v0 = vsub.f32 %v192_v60, %v524_v23 }
  0xa2   : > { %440 = vpow2.f32 %v304_v59  ;;  %v247_v1 = vsub.f32 %v187_v61, %v524_v23 }
  0xa3   : > { %v431_v2 = vpop.eup %430  ;;  %v310_v3 = vmul.f32 1.442695, %v284_v62  ;;  %v308_v4 = vmul.f32 1.442695, %v283_v63  ;;  %v267_v5 = vmul.f32 %v248_v0, %v248_v0 }
  0xa4   : > { %v433_v6 = vpop.eup %432  ;;  %337 = vst.msk [vmem:[%s540_s15 + $0x10] sm:$0xff] %vm334_vm0, %v431_v2  ;;  %v266_v7 = vmul.f32 %v247_v1, %v247_v1  ;;  %v202_v8 = vpop.permute.xlu1 %201 }
  0xa5   : > { %v197_v9 = vpop.permute.xlu0 %196  ;;  %335 = vst.msk [vmem:[%s540_s15] sm:$0xff] %vm334_vm0, %v433_v6  ;;  %442 = vpow2.f32 %v310_v3  ;;  %v286_v10 = vmul.f32 -8.0, %v267_v5  ;;  %v250_v11 = vsub.f32 %v202_v8, %v524_v23 }
  0xa6   : > { %v249_v12 = vsub.f32 %v197_v9, %v524_v23  ;;  %444 = vpow2.f32 %v308_v4  ;;  %v285_v13 = vmul.f32 -8.0, %v266_v7 }
  0xa7   : > { %v435_v14 = vpop.eup %434  ;;  %v314_v15 = vmul.f32 1.442695, %v286_v10  ;;  %v269_v16 = vmul.f32 %v250_v11, %v250_v11 }
  0xa8   : > { %v268_v17 = vmul.f32 %v249_v12, %v249_v12  ;;  %v437_v18 = vpop.eup %436  ;;  %338 = vst.msk [vmem:[%s540_s15 + $0x18] sm:$0xff] %vm334_vm0, %v435_v14  ;;  %v312_v19 = vmul.f32 1.442695, %v285_v13  ;;  %v212_v20 = vpop.permute.xlu1 %211 }
  0xa9   : > { %v207_v21 = vpop.permute.xlu0 %206  ;;  %336 = vst.msk [vmem:[%s540_s15 + $0x8] sm:$0xff] %vm334_vm0, %v437_v18  ;;  %446 = vpow2.f32 %v314_v15  ;;  %v288_v22 = vmul.f32 -8.0, %v269_v16  ;;  %v252_v25 = vsub.f32 %v212_v20, %v524_v23 }
  0xaa   : > { %v287_v24 = vmul.f32 -8.0, %v268_v17  ;;  %448 = vpow2.f32 %v312_v19  ;;  %v251_v26 = vsub.f32 %v207_v21, %v524_v23 }
  0xab   : > { %v439_v27 = vpop.eup %438  ;;  %v318_v28 = vmul.f32 1.442695, %v288_v22  ;;  %v271_v30 = vmul.f32 %v252_v25, %v252_v25 }
  0xac   : > { %v316_v29 = vmul.f32 1.442695, %v287_v24  ;;  %v441_v31 = vpop.eup %440  ;;  %340 = vst.msk [vmem:[%s540_s15 + $0x28] sm:$0xff] %vm334_vm0, %v439_v27  ;;  %v270_v32 = vmul.f32 %v251_v26, %v251_v26  ;;  %v222_v33 = vpop.permute.xlu1 %221 }
  0xad   : > { %v217_v34 = vpop.permute.xlu0 %216  ;;  %339 = vst.msk [vmem:[%s540_s15 + $0x20] sm:$0xff] %vm334_vm0, %v441_v31  ;;  %450 = vpow2.f32 %v318_v28  ;;  %v290_v35 = vmul.f32 -8.0, %v271_v30  ;;  %v254_v36 = vsub.f32 %v222_v33, %v524_v23 }
  0xae   : > { %v253_v37 = vsub.f32 %v217_v34, %v524_v23  ;;  %452 = vpow2.f32 %v316_v29  ;;  %v289_v38 = vmul.f32 -8.0, %v270_v32 }
  0xaf   : > { %v443_v39 = vpop.eup %442  ;;  %v322_v40 = vmul.f32 1.442695, %v290_v35  ;;  %v273_v41 = vmul.f32 %v254_v36, %v254_v36 }
  0xb0   : > { %v272_v42 = vmul.f32 %v253_v37, %v253_v37  ;;  %v445_v43 = vpop.eup %444  ;;  %342 = vst.msk [vmem:[%s540_s15 + $0x38] sm:$0xff] %vm334_vm0, %v443_v39  ;;  %v320_v44 = vmul.f32 1.442695, %v289_v38  ;;  %v232_v45 = vpop.permute.xlu1 %231 }
  0xb1   : > { %v227_v46 = vpop.permute.xlu0 %226  ;;  %341 = vst.msk [vmem:[%s540_s15 + $0x30] sm:$0xff] %vm334_vm0, %v445_v43  ;;  %454 = vpow2.f32 %v322_v40  ;;  %v292_v47 = vmul.f32 -8.0, %v273_v41  ;;  %v256_v49 = vsub.f32 %v232_v45, %v524_v23 }
  0xb2   : > { %v291_v48 = vmul.f32 -8.0, %v272_v42  ;;  %456 = vpow2.f32 %v320_v44  ;;  %v255_v50 = vsub.f32 %v227_v46, %v524_v23 }
  0xb3   : > { %v447_v51 = vpop.eup %446  ;;  %v326_v52 = vmul.f32 1.442695, %v292_v47  ;;  %v275_v54 = vmul.f32 %v256_v49, %v256_v49 }
  0xb4   : > { %v324_v53 = vmul.f32 1.442695, %v291_v48  ;;  %v449_v55 = vpop.eup %448  ;;  %344 = vst.msk [vmem:[%s540_s15 + $0x48] sm:$0xff] %vm334_vm0, %v447_v51  ;;  %v274_v56 = vmul.f32 %v255_v50, %v255_v50 }
  0xb5   : > { %v237_v57 = vpop.permute.xlu0 %236  ;;  %343 = vst.msk [vmem:[%s540_s15 + $0x40] sm:$0xff] %vm334_vm0, %v449_v55  ;;  %458 = vpow2.f32 %v326_v52  ;;  %v294_v58 = vmul.f32 -8.0, %v275_v54 }
  0xb6   : > { %v257_v59 = vsub.f32 %v237_v57, %v524_v23  ;;  %460 = vpow2.f32 %v324_v53  ;;  %v293_v60 = vmul.f32 -8.0, %v274_v56 }
  0xb7   : > { %v451_v61 = vpop.eup %450  ;;  %v330_v62 = vmul.f32 1.442695, %v294_v58 }
  0xb8   : > { %v276_v63 = vmul.f32 %v257_v59, %v257_v59  ;;  %v453_v0 = vpop.eup %452  ;;  %346 = vst.msk [vmem:[%s540_s15 + $0x58] sm:$0xff] %vm334_vm0, %v451_v61  ;;  %v328_v1 = vmul.f32 1.442695, %v293_v60 }
  0xb9   : > { %345 = vst.msk [vmem:[%s540_s15 + $0x50] sm:$0xff] %vm334_vm0, %v453_v0  ;;  %462 = vpow2.f32 %v330_v62 }
  0xba   : > { %v295_v2 = vmul.f32 -8.0, %v276_v63  ;;  %464 = vpow2.f32 %v328_v1 }
  0xbb   : > { %v455_v23 = vpop.eup %454 }
  0xbc   : > { %v332_v3 = vmul.f32 1.442695, %v295_v2  ;;  %v457_v4 = vpop.eup %456  ;;  %348 = vst.msk [vmem:[%s540_s15 + $0x68] sm:$0xff] %vm334_vm0, %v455_v23 }
  0xbd   : > { %347 = vst.msk [vmem:[%s540_s15 + $0x60] sm:$0xff] %vm334_vm0, %v457_v4 }
  0xbe   : > { %466 = vpow2.f32 %v332_v3 }
  0xbf   : > { %v459_v5 = vpop.eup %458 }
  0xc0   : > { %v461_v6 = vpop.eup %460  ;;  %350 = vst.msk [vmem:[%s540_s15 + $0x78] sm:$0xff] %vm334_vm0, %v459_v5 }
  0xc1   : > { %349 = vst.msk [vmem:[%s540_s15 + $0x70] sm:$0xff] %vm334_vm0, %v461_v6 }
  0xc3   : > { %v463_v7 = vpop.eup %462 }
  0xc4   : > { %v465_v8 = vpop.eup %464  ;;  %352 = vst.msk [vmem:[%s540_s15 + $0x88] sm:$0xff] %vm334_vm0, %v463_v7 }
  0xc5   : > { %351 = vst.msk [vmem:[%s540_s15 + $0x80] sm:$0xff] %vm334_vm0, %v465_v8 }
  0xc8   : > { %v467_v9 = vpop.eup %466 }
  0xc9   : > { %353 = vst.msk [vmem:[%s540_s15 + $0x90] sm:$0xff] %vm334_vm0, %v467_v9 }
  0xca PF: > { %s11_s6 = sadd.s32 1, %s474_s6  }
  0xcb   : > { %p8_p4 = scmp.ge.s32.totalorder %s11_s6, 4  }
  0xcd   :  { %10 = sbr.rel (!%p8_p4) target bundleno = 1 (0x1), region = 54 }

</bundles_post_ra>
